<compile_context>
chip_gen: v7x
topology: tpu7x:2x2x1
jax: 0.10.0
libtpu: 0.0.40
codegen_flags: <defaults>
</compile_context>

<pallas_src>
import math

import jax
import jax.numpy as jnp
from jax import lax
from jax.experimental import pallas as pl
from jax.experimental.pallas import tpu as pltpu


LN_EPS = 1e-5  # torch.nn.LayerNorm default


def _gelu_exact(x):
    # PyTorch nn.GELU() default = exact erf-based GELU.
    return 0.5 * x * (1.0 + lax.erf(x * (1.0 / math.sqrt(2.0))))


def _round_up(a, m):
    return (a + m - 1) // m * m


def _tensorcores_per_chip():
    # Best-effort generation sniff: only v7x has 2 TensorCores per chip.
    try:
        kind = jax.devices()[0].device_kind.lower()
    except Exception:
        return 1
    return 2 if "v7" in kind else 1


# ---------------------------------------------------------------------------
# kernel
# ---------------------------------------------------------------------------

def _fourier_kernel(x_ref, d2_ref, ph_ref, w1cs_ref, w1x_ref, b1_ref,
                    g1_ref, be1_ref, mg_ref, w2_ref, accb_ref,
                    go_ref, bo_ref, mo_ref, wo_ref, boo_ref, out_ref):
    f32 = jnp.float32
    x = x_ref[...].astype(f32)                                   # [Tn, I]

    # Fourier features: one MXU matmul + one cos over the doubled lane group.
    # cos half has phase 0, sin half has phase -pi/2 (cos(t - pi/2) = sin(t)).
    ang = jnp.dot(x, d2_ref[...], preferred_element_type=f32) + ph_ref[...]
    cs = jnp.cos(ang)                                            # [Tn, 2*I*F]

    # First Linear of every per-input MLP at once (cos|sin stacked weights +
    # the x passthrough column block), block-diagonal over inputs.
    h = (jnp.dot(cs, w1cs_ref[...], preferred_element_type=f32)
         + jnp.dot(x, w1x_ref[...], preferred_element_type=f32)
         + b1_ref[...])                                          # [Tn, I*H]

    # Per-input LayerNorm with MXU-computed group statistics:
    # mg is blockdiag(ones(H,H)/H), so h @ mg broadcasts each group mean to all
    # H lanes of its group.  Variance uses the E[(x-m)^2] two-matmul form.
    mean_g = jnp.dot(h, mg_ref[...], preferred_element_type=f32)
    cen = h - mean_g
    var_g = jnp.dot(cen * cen, mg_ref[...], preferred_element_type=f32)
    h = cen * lax.rsqrt(var_g + LN_EPS) * g1_ref[...] + be1_ref[...]
    h = _gelu_exact(h)

    # Second Linear of every per-input MLP, stacked vertically [I*H, H]:
    # the contraction itself performs the sum over the I MLP outputs.
    acc = jnp.dot(h, w2_ref[...], preferred_element_type=f32) + accb_ref[...]

    # out head: LayerNorm (matmul statistics) -> GELU -> Linear.
    m = jnp.dot(acc, mo_ref[...], preferred_element_type=f32)
    c = acc - m
    v = jnp.dot(c * c, mo_ref[...], preferred_element_type=f32)
    y = c * lax.rsqrt(v + LN_EPS) * go_ref[...] + bo_ref[...]
    y = _gelu_exact(y)
    y = jnp.dot(y, wo_ref[...], preferred_element_type=f32) + boo_ref[...]

    out_ref[...] = y.astype(out_ref.dtype)


# ---------------------------------------------------------------------------
# one-time weight packing (MXU-friendly slabs)
# ---------------------------------------------------------------------------

def pack_params(params):
    """Pack the nn.Module weights into kernel-friendly slabs (done once)."""
    dense = params["dense"]                    # [I, F]
    w1 = params["w1"]                          # [I, 2F+1, H]
    w2 = params["w2"]                          # [I, H, H]
    I, F = dense.shape
    H = w1.shape[-1]
    IF, IH = I * F, I * H

    # Angle matmul: d2[i, i*F:(i+1)*F] = d2[i, IF+i*F:IF+(i+1)*F] = 2*pi*dense[i]
    dense2pi = dense * (2.0 * math.pi)
    d2 = jnp.zeros((I, 2 * IF), jnp.float32)
    for i in range(I):
        d2 = d2.at[i, i * F:(i + 1) * F].set(dense2pi[i])
        d2 = d2.at[i, IF + i * F:IF + (i + 1) * F].set(dense2pi[i])
    phase = jnp.concatenate(
        [jnp.zeros((1, IF), jnp.float32),
         jnp.full((1, IF), -0.5 * math.pi, jnp.float32)], axis=-1)

    # First Linear: block-diagonal over inputs; cos and sin halves stacked
    # vertically so a single [2*IF, IH] matmul consumes cos|sin directly.
    eye = jnp.eye(I, dtype=jnp.float32)
    w1c = (w1[:, :F, :][:, :, None, :] * eye[:, None, :, None]).reshape(IF, IH)
    w1s = (w1[:, F:2 * F, :][:, :, None, :] * eye[:, None, :, None]).reshape(IF, IH)
    w1cs = jnp.concatenate([w1c, w1s], axis=0)                   # [2*IF, IH]
    w1x = (w1[:, 2 * F, :][:, None, :] * eye[:, :, None]).reshape(I, IH)

    # Grouped-LN averaging matrices (block-diag 1/H, and plain 1/H for out-head).
    m_grp = jnp.kron(jnp.eye(I, dtype=jnp.float32),
                     jnp.full((H, H), 1.0 / H, jnp.float32))     # [IH, IH]
    m_out = jnp.full((H, H), 1.0 / H, jnp.float32)               # [H, H]

    # Second Linear stacked vertically: h[Tn, IH] @ w2s = sum_i h_i @ w2[i].
    w2s = w2.reshape(IH, H)

    return {
        "d2": d2,
        "phase": phase,
        "w1cs": w1cs,
        "w1x": w1x,
        "b1": params["b1"].reshape(1, IH),
        "g1": params["g1"].reshape(1, IH),
        "be1": params["be1"].reshape(1, IH),
        "m_grp": m_grp,
        "w2": w2s,
        "acc_b": params["b2"].sum(axis=0).reshape(1, H),
        "g_out": params["g_out"].reshape(1, H),
        "b_out": params["b_out"].reshape(1, H),
        "m_out": m_out,
        "w_out": params["w_out"],
        "bias_out": params["bias_out"].reshape(1, H),
    }


_PARAM_ORDER = ("d2", "phase", "w1cs", "w1x", "b1", "g1", "be1", "m_grp",
                "w2", "acc_b", "g_out", "b_out", "m_out", "w_out", "bias_out")


# ---------------------------------------------------------------------------
# wrapper
# ---------------------------------------------------------------------------

def fourier_embedding(x, packed, *, tile_n=1024):
    """x: [b, polygons, input_size] f32 -> [b, polygons, hidden_size]."""
    b, p, input_size = x.shape
    I = input_size
    F = packed["d2"].shape[-1] // (2 * I)
    H = packed["w_out"].shape[0]

    n = b * p
    x2d = x.reshape(n, I)

    # Row tile: large (amortizes ~0.35us/step grid overhead, fills the MXU).
    # On 2-TensorCore chips (v7x) keep >=2 grid steps so both cores get work;
    # on single-core v5e/v6e prefer one max-size step (less padding/pipeline
    # overhead for small inputs).  VMEM is far below the scoped limit on every
    # generation at tile<=2048 (weights <300 KiB, blocks lane-pad to ~1 MiB).
    tile = min(tile_n, _round_up(n, 8))
    tile = max(8, _round_up(tile, 8))
    if _tensorcores_per_chip() >= 2:
        if _round_up(n, tile) // tile < 2 and tile > 8:
            tile = max(8, _round_up(tile // 2, 8))
    n_pad = _round_up(n, tile)
    if n_pad != n:
        x2d = jnp.pad(x2d, ((0, n_pad - n), (0, 0)))

    grid = (n_pad // tile,)

    def full(arr):
        return pl.BlockSpec(arr.shape, lambda i, _nd=arr.ndim: (0,) * _nd)

    weight_bytes = sum(int(v.size) * v.dtype.itemsize for v in packed.values())
    # Useful (non-zero-block) flops only; weights counted once per call.
    flops_per_row = (2 * I * 2 * F                   # angle matmul (nonzero blocks)
                     + 2 * (2 * F + 1) * I * H       # first Linear (all I MLPs)
                     + 2 * 2 * I * H * I * H         # grouped-LN stat matmuls
                     + 2 * I * H * H                 # stacked second Linear
                     + 2 * 2 * H * H                 # out-head stat matmuls
                     + 2 * H * H)                    # out Linear
    cost = pl.CostEstimate(
        flops=int(n_pad * flops_per_row),
        transcendentals=int(n_pad * (2 * I * F + I * H + H + I + 1)),
        bytes_accessed=int(n_pad * (I + H) * 4 + weight_bytes),
    )

    out2d = pl.pallas_call(
        _fourier_kernel,
        out_shape=jax.ShapeDtypeStruct((n_pad, H), x.dtype),
        grid_spec=pltpu.PrefetchScalarGridSpec(
            num_scalar_prefetch=0,
            grid=grid,
            in_specs=[pl.BlockSpec((tile, I), lambda i: (i, 0))]
                     + [full(packed[k]) for k in _PARAM_ORDER],
            out_specs=pl.BlockSpec((tile, H), lambda i: (i, 0)),
        ),
        compiler_params=pltpu.CompilerParams(
            dimension_semantics=("parallel",)),
        cost_estimate=cost,
    )(x2d, *[packed[k] for k in _PARAM_ORDER])

    return out2d[:n].reshape(b, p, H)


# ---------------------------------------------------------------------------
# parameters & reference
# ---------------------------------------------------------------------------

def init_params(key, input_size, hidden_size, freq_bands):
    """Deterministic synthetic parameters (shapes match the nn.Module)."""
    f_in = freq_bands * 2 + 1
    ks = jax.random.split(key, 8)
    scale1 = 1.0 / math.sqrt(f_in)
    scale2 = 1.0 / math.sqrt(hidden_size)
    return {
        "dense": jax.random.normal(ks[0], (input_size, freq_bands), jnp.float32),
        "w1": jax.random.uniform(ks[1], (input_size, f_in, hidden_size),
                                 jnp.float32, -scale1, scale1),
        "b1": jax.random.uniform(ks[2], (input_size, hidden_size),
                                 jnp.float32, -scale1, scale1),
        "g1": jnp.ones((input_size, hidden_size), jnp.float32),
        "be1": jnp.zeros((input_size, hidden_size), jnp.float32),
        "w2": jax.random.uniform(ks[3], (input_size, hidden_size, hidden_size),
                                 jnp.float32, -scale2, scale2),
        "b2": jax.random.uniform(ks[4], (input_size, hidden_size),
                                 jnp.float32, -scale2, scale2),
        "g_out": jnp.ones((1, hidden_size), jnp.float32),
        "b_out": jnp.zeros((1, hidden_size), jnp.float32),
        "w_out": jax.random.uniform(ks[5], (hidden_size, hidden_size),
                                    jnp.float32, -scale2, scale2),
        "bias_out": jax.random.uniform(ks[6], (1, hidden_size),
                                       jnp.float32, -scale2, scale2),
    }


def _reference(x, params):
    """Pure-JAX reference mirroring the PyTorch forward."""
    dense = params["dense"]
    out = jnp.einsum("ijk,kl->ijkl", x, dense) * 2.0 * math.pi
    out = jnp.concatenate([jnp.cos(out), jnp.sin(out), x[..., None]], axis=-1)
    acc = 0.0
    for i in range(x.shape[-1]):
        h = out[:, :, i] @ params["w1"][i] + params["b1"][i]
        mean = h.mean(-1, keepdims=True)
        var = jnp.square(h - mean).mean(-1, keepdims=True)
        h = (h - mean) / jnp.sqrt(var + LN_EPS) * params["g1"][i] + params["be1"][i]
        h = jax.nn.gelu(h, approximate=False)
        h = h @ params["w2"][i] + params["b2"][i]
        acc = acc + h
    mean = acc.mean(-1, keepdims=True)
    var = jnp.square(acc - mean).mean(-1, keepdims=True)
    y = (acc - mean) / jnp.sqrt(var + LN_EPS) * params["g_out"][0] + params["b_out"][0]
    y = jax.nn.gelu(y, approximate=False)
    return y @ params["w_out"] + params["bias_out"][0]


if __name__ == "__main__":
    B, POLY, INPUT_SIZE = 2, 8, 4
    HIDDEN, FREQ_BANDS = 32, 8

    key = jax.random.PRNGKey(0)
    k_x, k_p = jax.random.split(key)
    x = jax.random.normal(k_x, (B, POLY, INPUT_SIZE), jnp.float32)
    params = init_params(k_p, INPUT_SIZE, HIDDEN, FREQ_BANDS)
    packed = pack_params(params)

    out = fourier_embedding(x, packed)
    out = jax.block_until_ready(out)

    ref = _reference(x, params)
    assert out.shape == (B, POLY, HIDDEN)
    # Tolerance absorbs MXU multi-pass f32 rounding of the matmul-based LN
    # statistics / angle path; genuine packing bugs produce O(0.1+) errors.
    assert jnp.allclose(out, ref, atol=1e-3, rtol=1e-3), "mismatch vs reference"
    print("KERNEL_OK")
</pallas_src>

<mosaic_0001>
module attributes {stable_mosaic.version = 11 : i64} {
  func.func @_fourier_kernel(%arg0: i32, %arg1: memref<16x4xf32, #tpu.memory_space<vmem>>, %arg2: memref<4x64xf32, #tpu.memory_space<vmem>>, %arg3: memref<1x64xf32, #tpu.memory_space<vmem>>, %arg4: memref<64x128xf32, #tpu.memory_space<vmem>>, %arg5: memref<4x128xf32, #tpu.memory_space<vmem>>, %arg6: memref<1x128xf32, #tpu.memory_space<vmem>>, %arg7: memref<1x128xf32, #tpu.memory_space<vmem>>, %arg8: memref<1x128xf32, #tpu.memory_space<vmem>>, %arg9: memref<128x128xf32, #tpu.memory_space<vmem>>, %arg10: memref<128x32xf32, #tpu.memory_space<vmem>>, %arg11: memref<1x32xf32, #tpu.memory_space<vmem>>, %arg12: memref<1x32xf32, #tpu.memory_space<vmem>>, %arg13: memref<1x32xf32, #tpu.memory_space<vmem>>, %arg14: memref<32x32xf32, #tpu.memory_space<vmem>>, %arg15: memref<32x32xf32, #tpu.memory_space<vmem>>, %arg16: memref<1x32xf32, #tpu.memory_space<vmem>>, %arg17: memref<16x32xf32, #tpu.memory_space<vmem>>) attributes {dimension_semantics = [#tpu.dimension_semantics<parallel>], iteration_bounds = array<i64: 1>, scalar_prefetch = 0 : i64, scratch_operands = 0 : i64, tpu.core_type = #tpu.core_type<tc>, window_params = [{transform_indices = @transform_0, window_bounds = array<i64: 16, 4>}, {pipeline_mode = #tpu.pipeline_mode<synchronous>, transform_indices = @transform_1, window_bounds = array<i64: 4, 64>}, {pipeline_mode = #tpu.pipeline_mode<synchronous>, transform_indices = @transform_2, window_bounds = array<i64: 1, 64>}, {pipeline_mode = #tpu.pipeline_mode<synchronous>, transform_indices = @transform_3, window_bounds = array<i64: 64, 128>}, {pipeline_mode = #tpu.pipeline_mode<synchronous>, transform_indices = @transform_4, window_bounds = array<i64: 4, 128>}, {pipeline_mode = #tpu.pipeline_mode<synchronous>, transform_indices = @transform_5, window_bounds = array<i64: 1, 128>}, {pipeline_mode = #tpu.pipeline_mode<synchronous>, transform_indices = @transform_6, window_bounds = array<i64: 1, 128>}, {pipeline_mode = #tpu.pipeline_mode<synchronous>, transform_indices = @transform_7, window_bounds = array<i64: 1, 128>}, {pipeline_mode = #tpu.pipeline_mode<synchronous>, transform_indices = @transform_8, window_bounds = array<i64: 128, 128>}, {pipeline_mode = #tpu.pipeline_mode<synchronous>, transform_indices = @transform_9, window_bounds = array<i64: 128, 32>}, {pipeline_mode = #tpu.pipeline_mode<synchronous>, transform_indices = @transform_10, window_bounds = array<i64: 1, 32>}, {pipeline_mode = #tpu.pipeline_mode<synchronous>, transform_indices = @transform_11, window_bounds = array<i64: 1, 32>}, {pipeline_mode = #tpu.pipeline_mode<synchronous>, transform_indices = @transform_12, window_bounds = array<i64: 1, 32>}, {pipeline_mode = #tpu.pipeline_mode<synchronous>, transform_indices = @transform_13, window_bounds = array<i64: 32, 32>}, {pipeline_mode = #tpu.pipeline_mode<synchronous>, transform_indices = @transform_14, window_bounds = array<i64: 32, 32>}, {pipeline_mode = #tpu.pipeline_mode<synchronous>, transform_indices = @transform_15, window_bounds = array<i64: 1, 32>}, {transform_indices = @transform_16, window_bounds = array<i64: 16, 32>}]} {
    %c0 = arith.constant 0 : index
    %c0_0 = arith.constant 0 : index
    %0 = vector.load %arg1[%c0, %c0_0] : memref<16x4xf32, #tpu.memory_space<vmem>>, vector<16x4xf32>
    %c0_1 = arith.constant 0 : index
    %c0_2 = arith.constant 0 : index
    %1 = vector.load %arg2[%c0_1, %c0_2] : memref<4x64xf32, #tpu.memory_space<vmem>>, vector<4x64xf32>
    %cst = arith.constant dense<0.000000e+00> : vector<16x64xf32>
    %2 = tpu.matmul %0, %1, %cst {dimension_numbers = #tpu.dot_dimension_numbers<[1], [0], [0], [1], [0, 0, 1, 1], [], []>} : vector<16x4xf32>, vector<4x64xf32>, vector<16x64xf32> -> vector<16x64xf32>
    %c0_3 = arith.constant 0 : index
    %c0_4 = arith.constant 0 : index
    %3 = vector.load %arg3[%c0_3, %c0_4] : memref<1x64xf32, #tpu.memory_space<vmem>>, vector<1x64xf32>
    %4 = vector.broadcast %3 : vector<1x64xf32> to vector<16x64xf32>
    %5 = arith.addf %2, %4 : vector<16x64xf32>
    %6 = math.cos %5 : vector<16x64xf32>
    %c0_5 = arith.constant 0 : index
    %c0_6 = arith.constant 0 : index
    %7 = vector.load %arg4[%c0_5, %c0_6] : memref<64x128xf32, #tpu.memory_space<vmem>>, vector<64x128xf32>
    %cst_7 = arith.constant dense<0.000000e+00> : vector<16x128xf32>
    %8 = tpu.matmul %6, %7, %cst_7 {dimension_numbers = #tpu.dot_dimension_numbers<[1], [0], [0], [1], [0, 0, 1, 1], [], []>} : vector<16x64xf32>, vector<64x128xf32>, vector<16x128xf32> -> vector<16x128xf32>
    %c0_8 = arith.constant 0 : index
    %c0_9 = arith.constant 0 : index
    %9 = vector.load %arg5[%c0_8, %c0_9] : memref<4x128xf32, #tpu.memory_space<vmem>>, vector<4x128xf32>
    %cst_10 = arith.constant dense<0.000000e+00> : vector<16x128xf32>
    %10 = tpu.matmul %0, %9, %cst_10 {dimension_numbers = #tpu.dot_dimension_numbers<[1], [0], [0], [1], [0, 0, 1, 1], [], []>} : vector<16x4xf32>, vector<4x128xf32>, vector<16x128xf32> -> vector<16x128xf32>
    %11 = arith.addf %8, %10 : vector<16x128xf32>
    %c0_11 = arith.constant 0 : index
    %c0_12 = arith.constant 0 : index
    %12 = vector.load %arg6[%c0_11, %c0_12] : memref<1x128xf32, #tpu.memory_space<vmem>>, vector<1x128xf32>
    %13 = vector.broadcast %12 : vector<1x128xf32> to vector<16x128xf32>
    %14 = arith.addf %11, %13 : vector<16x128xf32>
    %c0_13 = arith.constant 0 : index
    %c0_14 = arith.constant 0 : index
    %15 = vector.load %arg9[%c0_13, %c0_14] : memref<128x128xf32, #tpu.memory_space<vmem>>, vector<128x128xf32>
    %cst_15 = arith.constant dense<0.000000e+00> : vector<16x128xf32>
    %16 = tpu.matmul %14, %15, %cst_15 {dimension_numbers = #tpu.dot_dimension_numbers<[1], [0], [0], [1], [0, 0, 1, 1], [], []>} : vector<16x128xf32>, vector<128x128xf32>, vector<16x128xf32> -> vector<16x128xf32>
    %17 = arith.subf %14, %16 : vector<16x128xf32>
    %18 = arith.mulf %17, %17 : vector<16x128xf32>
    %c0_16 = arith.constant 0 : index
    %c0_17 = arith.constant 0 : index
    %19 = vector.load %arg9[%c0_16, %c0_17] : memref<128x128xf32, #tpu.memory_space<vmem>>, vector<128x128xf32>
    %cst_18 = arith.constant dense<0.000000e+00> : vector<16x128xf32>
    %20 = tpu.matmul %18, %19, %cst_18 {dimension_numbers = #tpu.dot_dimension_numbers<[1], [0], [0], [1], [0, 0, 1, 1], [], []>} : vector<16x128xf32>, vector<128x128xf32>, vector<16x128xf32> -> vector<16x128xf32>
    %cst_19 = arith.constant 9.99999974E-6 : f32
    %21 = vector.broadcast %cst_19 : f32 to vector<16x128xf32>
    %22 = arith.addf %20, %21 : vector<16x128xf32>
    %23 = math.rsqrt %22 : vector<16x128xf32>
    %24 = arith.mulf %17, %23 : vector<16x128xf32>
    %c0_20 = arith.constant 0 : index
    %c0_21 = arith.constant 0 : index
    %25 = vector.load %arg7[%c0_20, %c0_21] : memref<1x128xf32, #tpu.memory_space<vmem>>, vector<1x128xf32>
    %26 = vector.broadcast %25 : vector<1x128xf32> to vector<16x128xf32>
    %27 = arith.mulf %24, %26 : vector<16x128xf32>
    %c0_22 = arith.constant 0 : index
    %c0_23 = arith.constant 0 : index
    %28 = vector.load %arg8[%c0_22, %c0_23] : memref<1x128xf32, #tpu.memory_space<vmem>>, vector<1x128xf32>
    %29 = vector.broadcast %28 : vector<1x128xf32> to vector<16x128xf32>
    %30 = arith.addf %27, %29 : vector<16x128xf32>
    %cst_24 = arith.constant 5.000000e-01 : f32
    %31 = vector.broadcast %cst_24 : f32 to vector<16x128xf32>
    %32 = arith.mulf %31, %30 : vector<16x128xf32>
    %cst_25 = arith.constant 0.707106769 : f32
    %33 = vector.broadcast %cst_25 : f32 to vector<16x128xf32>
    %34 = arith.mulf %30, %33 : vector<16x128xf32>
    %35 = math.erf %34 : vector<16x128xf32>
    %cst_26 = arith.constant 1.000000e+00 : f32
    %36 = vector.broadcast %cst_26 : f32 to vector<16x128xf32>
    %37 = arith.addf %36, %35 : vector<16x128xf32>
    %38 = arith.mulf %32, %37 : vector<16x128xf32>
    %c0_27 = arith.constant 0 : index
    %c0_28 = arith.constant 0 : index
    %39 = vector.load %arg10[%c0_27, %c0_28] : memref<128x32xf32, #tpu.memory_space<vmem>>, vector<128x32xf32>
    %cst_29 = arith.constant dense<0.000000e+00> : vector<16x32xf32>
    %40 = tpu.matmul %38, %39, %cst_29 {dimension_numbers = #tpu.dot_dimension_numbers<[1], [0], [0], [1], [0, 0, 1, 1], [], []>} : vector<16x128xf32>, vector<128x32xf32>, vector<16x32xf32> -> vector<16x32xf32>
    %c0_30 = arith.constant 0 : index
    %c0_31 = arith.constant 0 : index
    %41 = vector.load %arg11[%c0_30, %c0_31] : memref<1x32xf32, #tpu.memory_space<vmem>>, vector<1x32xf32>
    %42 = vector.broadcast %41 : vector<1x32xf32> to vector<16x32xf32>
    %43 = arith.addf %40, %42 : vector<16x32xf32>
    %c0_32 = arith.constant 0 : index
    %c0_33 = arith.constant 0 : index
    %44 = vector.load %arg14[%c0_32, %c0_33] : memref<32x32xf32, #tpu.memory_space<vmem>>, vector<32x32xf32>
    %cst_34 = arith.constant dense<0.000000e+00> : vector<16x32xf32>
    %45 = tpu.matmul %43, %44, %cst_34 {dimension_numbers = #tpu.dot_dimension_numbers<[1], [0], [0], [1], [0, 0, 1, 1], [], []>} : vector<16x32xf32>, vector<32x32xf32>, vector<16x32xf32> -> vector<16x32xf32>
    %46 = arith.subf %43, %45 : vector<16x32xf32>
    %47 = arith.mulf %46, %46 : vector<16x32xf32>
    %c0_35 = arith.constant 0 : index
    %c0_36 = arith.constant 0 : index
    %48 = vector.load %arg14[%c0_35, %c0_36] : memref<32x32xf32, #tpu.memory_space<vmem>>, vector<32x32xf32>
    %cst_37 = arith.constant dense<0.000000e+00> : vector<16x32xf32>
    %49 = tpu.matmul %47, %48, %cst_37 {dimension_numbers = #tpu.dot_dimension_numbers<[1], [0], [0], [1], [0, 0, 1, 1], [], []>} : vector<16x32xf32>, vector<32x32xf32>, vector<16x32xf32> -> vector<16x32xf32>
    %cst_38 = arith.constant 9.99999974E-6 : f32
    %50 = vector.broadcast %cst_38 : f32 to vector<16x32xf32>
    %51 = arith.addf %49, %50 : vector<16x32xf32>
    %52 = math.rsqrt %51 : vector<16x32xf32>
    %53 = arith.mulf %46, %52 : vector<16x32xf32>
    %c0_39 = arith.constant 0 : index
    %c0_40 = arith.constant 0 : index
    %54 = vector.load %arg12[%c0_39, %c0_40] : memref<1x32xf32, #tpu.memory_space<vmem>>, vector<1x32xf32>
    %55 = vector.broadcast %54 : vector<1x32xf32> to vector<16x32xf32>
    %56 = arith.mulf %53, %55 : vector<16x32xf32>
    %c0_41 = arith.constant 0 : index
    %c0_42 = arith.constant 0 : index
    %57 = vector.load %arg13[%c0_41, %c0_42] : memref<1x32xf32, #tpu.memory_space<vmem>>, vector<1x32xf32>
    %58 = vector.broadcast %57 : vector<1x32xf32> to vector<16x32xf32>
    %59 = arith.addf %56, %58 : vector<16x32xf32>
    %cst_43 = arith.constant 5.000000e-01 : f32
    %60 = vector.broadcast %cst_43 : f32 to vector<16x32xf32>
    %61 = arith.mulf %60, %59 : vector<16x32xf32>
    %cst_44 = arith.constant 0.707106769 : f32
    %62 = vector.broadcast %cst_44 : f32 to vector<16x32xf32>
    %63 = arith.mulf %59, %62 : vector<16x32xf32>
    %64 = math.erf %63 : vector<16x32xf32>
    %cst_45 = arith.constant 1.000000e+00 : f32
    %65 = vector.broadcast %cst_45 : f32 to vector<16x32xf32>
    %66 = arith.addf %65, %64 : vector<16x32xf32>
    %67 = arith.mulf %61, %66 : vector<16x32xf32>
    %c0_46 = arith.constant 0 : index
    %c0_47 = arith.constant 0 : index
    %68 = vector.load %arg15[%c0_46, %c0_47] : memref<32x32xf32, #tpu.memory_space<vmem>>, vector<32x32xf32>
    %cst_48 = arith.constant dense<0.000000e+00> : vector<16x32xf32>
    %69 = tpu.matmul %67, %68, %cst_48 {dimension_numbers = #tpu.dot_dimension_numbers<[1], [0], [0], [1], [0, 0, 1, 1], [], []>} : vector<16x32xf32>, vector<32x32xf32>, vector<16x32xf32> -> vector<16x32xf32>
    %c0_49 = arith.constant 0 : index
    %c0_50 = arith.constant 0 : index
    %70 = vector.load %arg16[%c0_49, %c0_50] : memref<1x32xf32, #tpu.memory_space<vmem>>, vector<1x32xf32>
    %71 = vector.broadcast %70 : vector<1x32xf32> to vector<16x32xf32>
    %72 = arith.addf %69, %71 : vector<16x32xf32>
    %c0_51 = arith.constant 0 : index
    %c0_52 = arith.constant 0 : index
    %73 = vector.load %arg17[%c0_51, %c0_52] : memref<16x32xf32, #tpu.memory_space<vmem>>, vector<16x32xf32>
    tpu.vector_store %arg17[%c0_51, %c0_52], %72 {strides = array<i32>} : memref<16x32xf32, #tpu.memory_space<vmem>>, vector<16x32xf32>,
    return
  }
  func.func @transform_0(%arg0: i32) -> (i32, i32) {
    %c0_i32 = arith.constant 0 : i32
    %c0_i32_0 = arith.constant 0 : i32
    return %arg0, %c0_i32 : i32, i32
  }
  func.func @transform_1(%arg0: i32) -> (i32, i32) {
    %c0_i32 = arith.constant 0 : i32
    %c0_i32_0 = arith.constant 0 : i32
    %c0_i32_1 = arith.constant 0 : i32
    return %c0_i32, %c0_i32_0 : i32, i32
  }
  func.func @transform_2(%arg0: i32) -> (i32, i32) {
    %c0_i32 = arith.constant 0 : i32
    %c0_i32_0 = arith.constant 0 : i32
    %c0_i32_1 = arith.constant 0 : i32
    return %c0_i32, %c0_i32_0 : i32, i32
  }
  func.func @transform_3(%arg0: i32) -> (i32, i32) {
    %c0_i32 = arith.constant 0 : i32
    %c0_i32_0 = arith.constant 0 : i32
    %c0_i32_1 = arith.constant 0 : i32
    return %c0_i32, %c0_i32_0 : i32, i32
  }
  func.func @transform_4(%arg0: i32) -> (i32, i32) {
    %c0_i32 = arith.constant 0 : i32
    %c0_i32_0 = arith.constant 0 : i32
    %c0_i32_1 = arith.constant 0 : i32
    return %c0_i32, %c0_i32_0 : i32, i32
  }
  func.func @transform_5(%arg0: i32) -> (i32, i32) {
    %c0_i32 = arith.constant 0 : i32
    %c0_i32_0 = arith.constant 0 : i32
    %c0_i32_1 = arith.constant 0 : i32
    return %c0_i32, %c0_i32_0 : i32, i32
  }
  func.func @transform_6(%arg0: i32) -> (i32, i32) {
    %c0_i32 = arith.constant 0 : i32
    %c0_i32_0 = arith.constant 0 : i32
    %c0_i32_1 = arith.constant 0 : i32
    return %c0_i32, %c0_i32_0 : i32, i32
  }
  func.func @transform_7(%arg0: i32) -> (i32, i32) {
    %c0_i32 = arith.constant 0 : i32
    %c0_i32_0 = arith.constant 0 : i32
    %c0_i32_1 = arith.constant 0 : i32
    return %c0_i32, %c0_i32_0 : i32, i32
  }
  func.func @transform_8(%arg0: i32) -> (i32, i32) {
    %c0_i32 = arith.constant 0 : i32
    %c0_i32_0 = arith.constant 0 : i32
    %c0_i32_1 = arith.constant 0 : i32
    return %c0_i32, %c0_i32_0 : i32, i32
  }
  func.func @transform_9(%arg0: i32) -> (i32, i32) {
    %c0_i32 = arith.constant 0 : i32
    %c0_i32_0 = arith.constant 0 : i32
    %c0_i32_1 = arith.constant 0 : i32
    return %c0_i32, %c0_i32_0 : i32, i32
  }
  func.func @transform_10(%arg0: i32) -> (i32, i32) {
    %c0_i32 = arith.constant 0 : i32
    %c0_i32_0 = arith.constant 0 : i32
    %c0_i32_1 = arith.constant 0 : i32
    return %c0_i32, %c0_i32_0 : i32, i32
  }
  func.func @transform_11(%arg0: i32) -> (i32, i32) {
    %c0_i32 = arith.constant 0 : i32
    %c0_i32_0 = arith.constant 0 : i32
    %c0_i32_1 = arith.constant 0 : i32
    return %c0_i32, %c0_i32_0 : i32, i32
  }
  func.func @transform_12(%arg0: i32) -> (i32, i32) {
    %c0_i32 = arith.constant 0 : i32
    %c0_i32_0 = arith.constant 0 : i32
    %c0_i32_1 = arith.constant 0 : i32
    return %c0_i32, %c0_i32_0 : i32, i32
  }
  func.func @transform_13(%arg0: i32) -> (i32, i32) {
    %c0_i32 = arith.constant 0 : i32
    %c0_i32_0 = arith.constant 0 : i32
    %c0_i32_1 = arith.constant 0 : i32
    return %c0_i32, %c0_i32_0 : i32, i32
  }
  func.func @transform_14(%arg0: i32) -> (i32, i32) {
    %c0_i32 = arith.constant 0 : i32
    %c0_i32_0 = arith.constant 0 : i32
    %c0_i32_1 = arith.constant 0 : i32
    return %c0_i32, %c0_i32_0 : i32, i32
  }
  func.func @transform_15(%arg0: i32) -> (i32, i32) {
    %c0_i32 = arith.constant 0 : i32
    %c0_i32_0 = arith.constant 0 : i32
    %c0_i32_1 = arith.constant 0 : i32
    return %c0_i32, %c0_i32_0 : i32, i32
  }
  func.func @transform_16(%arg0: i32) -> (i32, i32) {
    %c0_i32 = arith.constant 0 : i32
    %c0_i32_0 = arith.constant 0 : i32
    return %arg0, %c0_i32 : i32, i32
  }
}

</mosaic_0001>

<bundles_post_ra>
// kernel: tpu_custom_call.1
= control target key start
LH: loop header
LB: loop body
LE: loop exit
PB: predicated region body
PF: predicated region fallthrough
CT: control target
= control target key end

     0   :  { %s2472_s0 = inlined_call_operand.vmem [shape: f32[16,4], index: 0, kind: input, shape index: {}]   ;;  %s2473_s1 = inlined_call_operand.hbm [shape: f32[4,64], index: 1, kind: input, shape index: {}]   ;;  %s2474_s2 = inlined_call_operand.vmem [shape: f32[1,64], index: 2, kind: input, shape index: {}]   ;;  %s2475_s3 = inlined_call_operand.vmem [shape: f32[64,128], index: 3, kind: input, shape index: {}]   ;;  %s2476_s4 = inlined_call_operand.hbm [shape: f32[4,128], index: 4, kind: input, shape index: {}]   ;;  %s2477_s5 = inlined_call_operand.hbm [shape: f32[1,128], index: 5, kind: input, shape index: {}]   ;;  %s2478_s6 = inlined_call_operand.hbm [shape: f32[1,128], index: 6, kind: input, shape index: {}]   ;;  %s2479_s7 = inlined_call_operand.hbm [shape: f32[1,128], index: 7, kind: input, shape index: {}]   ;;  %s2480_s8 = inlined_call_operand.vmem [shape: f32[128,128], index: 8, kind: input, shape index: {}]   ;;  %s2481_s9 = inlined_call_operand.vmem [shape: f32[128,32], index: 9, kind: input, shape index: {}]   ;;  %s2482_s10 = inlined_call_operand.hbm [shape: f32[1,32], index: 10, kind: input, shape index: {}]   ;;  %s2483_s11 = inlined_call_operand.hbm [shape: f32[1,32], index: 11, kind: input, shape index: {}]   ;;  %s2484_s12 = inlined_call_operand.hbm [shape: f32[1,32], index: 12, kind: input, shape index: {}]   ;;  %s2485_s13 = inlined_call_operand.vmem [shape: f32[32,32], index: 13, kind: input, shape index: {}]   ;;  %s2486_s14 = inlined_call_operand.hbm [shape: f32[32,32], index: 14, kind: input, shape index: {}]   ;;  %s2487_s15 = inlined_call_operand.vmem [shape: f32[1,32], index: 15, kind: input, shape index: {}]   ;;  %s2488_s16 = inlined_call_operand.hbm [shape: f32[16,32], index: 16, kind: output, shape index: {}]  }
   0x1   :  { %2490 = sst [smem:[#allocation24_spill]] %s2472_s0 }
   0x2   :  { %21 = vsyncpa [#allocation3], 0 }
   0x3   :  { %22 = vsyncpa [#allocation6], 0 }
   0x4   :  { %23 = vsyncpa [#allocation9], 0 }
   0x5   :  { %24 = vsyncpa [#allocation12], 0 }
   0x6   :  { %25 = vsyncpa [#allocation15], 0 }
   0x7   :  { %26 = vsyncpa [#allocation4], 0  ;;  %s1963_s21 = smov [#allocation5]   ;;  %s1964_s23 = smov [#allocation8]  }
   0x8   :  { %s49_s22 = sshll.u32 %s1963_s21, 4  ;;  %s69_s24 = sshll.u32 %s1964_s23, 4  ;;  %s50_s22 = int_to_ptr.vmem [resolvable:$true] %s49_s22  ;;  %s70_s24 = int_to_ptr.vmem [resolvable:$true] %s69_s24 }
   0x9   :  { %s1731_s27 = scalar_lea.hbm %s2476_s4, 64 }
   0xa   :  { %p1732_p0 = scmp.ne.s32.totalorder %s2476_s4, %s1731_s27  ;;  %p1735_p1 = scmp.lt.u32.totalorder %s1731_s27, %s2476_s4 }
   0xc   :  { %p1737_p2 = pnand %p1735_p1, %p1732_p0 }
   0xe   :  { %1740 = shalt.err (!%p1737_p2)
}
   0xf   :  { %s1741_s17 = scalar_lea.vmem %s50_s22, 64  ;;  %p1746_p4 = scmp.lt.s32.totalorder %s50_s22, %s50_s22 }
  0x10   :  { %p1742_p3 = scmp.ne.s32.totalorder %s50_s22, %s1741_s17  ;;  %p1747_p5 = scmp.lt.s32.totalorder %s1741_s17, %s1741_s17 }
  0x12   :  { %p1748_p6 = por %p1747_p5, %p1746_p4 }
  0x14   :  { %p1749_p7 = pnand %p1748_p6, %p1742_p3 }
  0x16   :  { %1752 = shalt.err (!%p1749_p7)
}
  0x17   :  { %52 = dma.hbm_to_vmem [thread:$0]  %s2476_s4, 64, %s50_s22, [#allocation6]  }
  0x18   :  { %s1753_s23 = scalar_lea.hbm %s2478_s6, 16 }
  0x19   :  { %p1754_p8 = scmp.ne.s32.totalorder %s2478_s6, %s1753_s23  ;;  %p1757_p9 = scmp.lt.u32.totalorder %s1753_s23, %s2478_s6 }
  0x1b   :  { %p1759_p10 = pnand %p1757_p9, %p1754_p8 }
  0x1d   :  { %1762 = shalt.err (!%p1759_p10)
}
  0x1e   :  { %s1763_s29 = scalar_lea.vmem %s70_s24, 16  ;;  %s1767_s30 = scalar_lea.vmem %s70_s24, 32 }
  0x1f   :  { %p1764_p11 = scmp.ne.s32.totalorder %s70_s24, %s1763_s29  ;;  %p1768_p12 = scmp.lt.s32.totalorder %s70_s24, %s70_s24 }
  0x20   :  { %p1769_p13 = scmp.lt.s32.totalorder %s1767_s30, %s1763_s29 }
  0x22   :  { %p1770_p0 = por %p1769_p13, %p1768_p12 }
  0x24   :  { %p1771_p1 = pnand %p1770_p0, %p1764_p11 }
  0x26   :  { %1774 = shalt.err (!%p1771_p1)
}
  0x27   :  { %72 = dma.hbm_to_vmem [thread:$0]  %s2478_s6, 16, %s70_s24, [#allocation9]  }
  0x28   :  { %s1965_s0 = smov [#allocation11]   ;;  %s1966_s18 = smov [#allocation14]  }
  0x29   :  { %s93_s17 = sshll.u32 %s1965_s0, 4  ;;  %s113_s19 = sshll.u32 %s1966_s18, 4  ;;  %s94_s17 = int_to_ptr.vmem [resolvable:$true] %s93_s17  ;;  %s114_s19 = int_to_ptr.vmem [resolvable:$true] %s113_s19 }
  0x2a   :  { %s1775_s23 = scalar_lea.hbm %s2482_s10, 16 }
  0x2b   :  { %p1776_p2 = scmp.ne.s32.totalorder %s2482_s10, %s1775_s23  ;;  %p1779_p3 = scmp.lt.u32.totalorder %s1775_s23, %s2482_s10 }
  0x2d   :  { %p1781_p4 = pnand %p1779_p3, %p1776_p2 }
  0x2f   :  { %1784 = shalt.err (!%p1781_p4)
}
  0x30   :  { %s1785_s6 = scalar_lea.vmem %s94_s17, 16  ;;  %s1789_s24 = scalar_lea.vmem %s94_s17, 32 }
  0x31   :  { %p1786_p5 = scmp.ne.s32.totalorder %s94_s17, %s1785_s6  ;;  %p1790_p6 = scmp.lt.s32.totalorder %s94_s17, %s94_s17 }
  0x32   :  { %p1791_p7 = scmp.lt.s32.totalorder %s1789_s24, %s1785_s6 }
  0x34   :  { %p1792_p8 = por %p1791_p7, %p1790_p6 }
  0x36   :  { %p1793_p9 = pnand %p1792_p8, %p1786_p5 }
  0x38   :  { %1796 = shalt.err (!%p1793_p9)
}
  0x39   :  { %96 = dma.hbm_to_vmem [thread:$0]  %s2482_s10, 16, %s94_s17, [#allocation12]  }
  0x3a   :  { %s1797_s0 = scalar_lea.hbm %s2484_s12, 16 }
  0x3b   :  { %p1798_p10 = scmp.ne.s32.totalorder %s2484_s12, %s1797_s0  ;;  %p1801_p11 = scmp.lt.u32.totalorder %s1797_s0, %s2484_s12 }
  0x3d   :  { %p1803_p12 = pnand %p1801_p11, %p1798_p10 }
  0x3f   :  { %1806 = shalt.err (!%p1803_p12)
}
  0x40   :  { %s1807_s25 = scalar_lea.vmem %s114_s19, 16  ;;  %s1811_s26 = scalar_lea.vmem %s114_s19, 32 }
  0x41   :  { %p1808_p13 = scmp.ne.s32.totalorder %s114_s19, %s1807_s25  ;;  %p1812_p0 = scmp.lt.s32.totalorder %s114_s19, %s114_s19 }
  0x42   :  { %p1813_p1 = scmp.lt.s32.totalorder %s1811_s26, %s1807_s25 }
  0x44   :  { %p1814_p2 = por %p1813_p1, %p1812_p0 }
  0x46   :  { %p1815_p3 = pnand %p1814_p2, %p1808_p13 }
  0x48   :  { %1818 = shalt.err (!%p1815_p3)
}
  0x49   :  { %116 = dma.hbm_to_vmem [thread:$0]  %s2484_s12, 16, %s114_s19, [#allocation15]  }
  0x4a   :  { %s1967_s27 = smov [#allocation2]   ;;  %s1968_s6 = smov [#allocation7]  }
  0x4b   :  { %s35_s28 = sshll.u32 %s1967_s27, 4  ;;  %s59_s24 = sshll.u32 %s1968_s6, 4  ;;  %s36_s28 = int_to_ptr.vmem [resolvable:$true] %s35_s28  ;;  %s60_s24 = int_to_ptr.vmem [resolvable:$true] %s59_s24 }
  0x4c   :  { %s1819_s4 = scalar_lea.hbm %s2473_s1, 64 }
  0x4d   :  { %p1820_p4 = scmp.ne.s32.totalorder %s2473_s1, %s1819_s4  ;;  %p1823_p5 = scmp.lt.u32.totalorder %s1819_s4, %s2473_s1 }
  0x4f   :  { %p1825_p6 = pnand %p1823_p5, %p1820_p4 }
  0x51   :  { %1828 = shalt.err (!%p1825_p6)
}
  0x52   :  { %s1829_s12 = scalar_lea.vmem %s36_s28, 64  ;;  %p1834_p8 = scmp.lt.s32.totalorder %s36_s28, %s36_s28 }
  0x53   :  { %p1830_p7 = scmp.ne.s32.totalorder %s36_s28, %s1829_s12  ;;  %p1835_p9 = scmp.lt.s32.totalorder %s1829_s12, %s1829_s12 }
  0x55   :  { %p1836_p10 = por %p1835_p9, %p1834_p8 }
  0x57   :  { %p1837_p11 = pnand %p1836_p10, %p1830_p7 }
  0x59   :  { %1840 = shalt.err (!%p1837_p11)
}
  0x5a   :  { %38 = dma.hbm_to_vmem [thread:$0]  %s2473_s1, 64, %s36_s28, [#allocation3]  }
  0x5b   :  { %s1841_s26 = scalar_lea.hbm %s2477_s5, 16 }
  0x5c   :  { %p1842_p12 = scmp.ne.s32.totalorder %s2477_s5, %s1841_s26  ;;  %p1845_p13 = scmp.lt.u32.totalorder %s1841_s26, %s2477_s5 }
  0x5e   :  { %p1847_p0 = pnand %p1845_p13, %p1842_p12 }
  0x60   :  { %1850 = shalt.err (!%p1847_p0)
}
  0x61   :  { %s1851_s29 = scalar_lea.vmem %s60_s24, 16  ;;  %s1855_s30 = scalar_lea.vmem %s60_s24, 32 }
  0x62   :  { %p1852_p1 = scmp.ne.s32.totalorder %s60_s24, %s1851_s29  ;;  %p1856_p2 = scmp.lt.s32.totalorder %s60_s24, %s60_s24 }
  0x63   :  { %p1857_p3 = scmp.lt.s32.totalorder %s1855_s30, %s1851_s29 }
  0x65   :  { %p1858_p4 = por %p1857_p3, %p1856_p2 }
  0x67   :  { %p1859_p5 = pnand %p1858_p4, %p1852_p1 }
  0x69   :  { %1862 = shalt.err (!%p1859_p5)
}
  0x6a   :  { %62 = dma.hbm_to_vmem [thread:$0]  %s2477_s5, 16, %s60_s24, [#allocation6]  }
  0x6b   :  { %s1969_s4 = smov [#allocation10]   ;;  %s1970_s0 = smov [#allocation13]  }
  0x6c   :  { %s79_s22 = sshll.u32 %s1969_s4, 4  ;;  %s103_s18 = sshll.u32 %s1970_s0, 4  ;;  %s80_s22 = int_to_ptr.vmem [resolvable:$true] %s79_s22  ;;  %s104_s18 = int_to_ptr.vmem [resolvable:$true] %s103_s18 }
  0x6d   :  { %s1863_s19 = scalar_lea.hbm %s2479_s7, 16 }
  0x6e   :  { %p1864_p6 = scmp.ne.s32.totalorder %s2479_s7, %s1863_s19  ;;  %p1867_p7 = scmp.lt.u32.totalorder %s1863_s19, %s2479_s7 }
  0x70   :  { %p1869_p8 = pnand %p1867_p7, %p1864_p6 }
  0x72   :  { %1872 = shalt.err (!%p1869_p8)
}
  0x73   :  { %s1873_s5 = scalar_lea.vmem %s80_s22, 16  ;;  %s1877_s24 = scalar_lea.vmem %s80_s22, 32 }
  0x74   :  { %p1874_p9 = scmp.ne.s32.totalorder %s80_s22, %s1873_s5  ;;  %p1878_p10 = scmp.lt.s32.totalorder %s80_s22, %s80_s22 }
  0x75   :  { %p1879_p11 = scmp.lt.s32.totalorder %s1877_s24, %s1873_s5 }
  0x77   :  { %p1880_p12 = por %p1879_p11, %p1878_p10 }
  0x79   :  { %p1881_p13 = pnand %p1880_p12, %p1874_p9 }
  0x7b   :  { %1884 = shalt.err (!%p1881_p13)
}
  0x7c   :  { %82 = dma.hbm_to_vmem [thread:$0]  %s2479_s7, 16, %s80_s22, [#allocation9]  }
  0x7d   :  { %s1885_s29 = scalar_lea.hbm %s2483_s11, 16 }
  0x7e   :  { %p1886_p0 = scmp.ne.s32.totalorder %s2483_s11, %s1885_s29  ;;  %p1889_p1 = scmp.lt.u32.totalorder %s1885_s29, %s2483_s11 }
  0x80   :  { %p1891_p2 = pnand %p1889_p1, %p1886_p0 }
  0x82   :  { %1894 = shalt.err (!%p1891_p2)
}
  0x83   :  { %s1895_s0 = scalar_lea.vmem %s104_s18, 16  ;;  %s1899_s20 = scalar_lea.vmem %s104_s18, 32 }
  0x84   :  { %p1896_p3 = scmp.ne.s32.totalorder %s104_s18, %s1895_s0  ;;  %p1900_p4 = scmp.lt.s32.totalorder %s104_s18, %s104_s18 }
  0x85   :  { %p1901_p5 = scmp.lt.s32.totalorder %s1899_s20, %s1895_s0 }
  0x87   :  { %p1902_p6 = por %p1901_p5, %p1900_p4 }
  0x89   :  { %p1903_p7 = pnand %p1902_p6, %p1896_p3 }
  0x8b   :  { %1906 = shalt.err (!%p1903_p7)
}
  0x8c   :  { %106 = dma.hbm_to_vmem [thread:$0]  %s2483_s11, 16, %s104_s18, [#allocation12]  }
  0x8d   :  { %s1971_s12 = smov [#allocation16]   ;;  %s1907_s25 = scalar_lea.hbm %s2486_s14, 512 }
  0x8e   :  { %s124_s19 = sshll.u32 %s1971_s12, 4  ;;  %p1908_p8 = scmp.ne.s32.totalorder %s2486_s14, %s1907_s25  ;;  %s125_s19 = int_to_ptr.vmem [resolvable:$true] %s124_s19 }
  0x8f   :  { %p1911_p9 = scmp.lt.u32.totalorder %s1907_s25, %s2486_s14 }
  0x91   :  { %p1913_p10 = pnand %p1911_p9, %p1908_p8 }
  0x93   :  { %1916 = shalt.err (!%p1913_p10)
}
  0x94   :  { %s1917_s17 = scalar_lea.vmem %s125_s19, 512  ;;  %p1922_p12 = scmp.lt.s32.totalorder %s125_s19, %s125_s19 }
  0x95   :  { %p1918_p11 = scmp.ne.s32.totalorder %s125_s19, %s1917_s17  ;;  %p1923_p13 = scmp.lt.s32.totalorder %s1917_s17, %s1917_s17 }
  0x97   :  { %p1924_p0 = por %p1923_p13, %p1922_p12 }
  0x99   :  { %p1925_p1 = pnand %p1924_p0, %p1918_p11 }
  0x9b   :  { %1928 = shalt.err (!%p1925_p1)
}
  0x9c   :  { %s1972_s11 = smov 128   ;;  %s1973_s18 = smov 8  }
  0x9d   :  { %130 = dma.hbm_to_vmem [thread:$0]  %s2486_s14, 512, %s125_s19, [#allocation15], %s1972_s11, %s1972_s11, %s1973_s18  }
  0x9e   :  { %1951 = dma.done.wait [#allocation3], 64  }
  0x9f   :  { %1952 = vsyncadd [#allocation3], 4294967232 }
  0xa0   :  { %1953 = dma.done.wait [#allocation6], 80  }
  0xa1   :  { %1954 = vsyncadd [#allocation6], 4294967216 }
  0xa2   :  { %1955 = dma.done.wait [#allocation9], 32  }
  0xa3   :  { %1956 = vsyncadd [#allocation9], 4294967264 }
  0xa4   :  { %1957 = dma.done.wait [#allocation12], 32  }
  0xa5   :  { %1958 = vsyncadd [#allocation12], 4294967264 }
  0xa6   :  { %1959 = dma.done.wait [#allocation15], 528  }
  0xa7   :  { %1960 = vsyncadd [#allocation15], 4294966768  ;;  %vm177_vm0 = vcmask 1043456   ;;  %vm170_vm1 = vcmask 31744   ;;  %v162_v0 = vld [vmem:[#allocation2] sm:$0xf] }
  0xa8   :  { %s2491_s1 = sld [smem:[#allocation24_spill]]  ;;  %1376 = vmatprep.subr.msk.mxu1 %vm177_vm0, %v162_v0  ;;  %v470_v3 = vld [vmem:[#allocation5] sm:$0xf]  ;;  %v462_v4 = vld [vmem:[%s2475_s3] sm:$0xff]  ;;  %v463_v5 = vld [vmem:[%s2475_s3 + $0x8] sm:$0xff]  ;;  %s1980_s29 = smov [#allocation17]  }
  0xa9   :  { %1377 = vmatpush3.msk.msra.mxu1 %vm177_vm0, %v162_v0  ;;  %v1543_v6 = vpack.c.bf16 %v463_v5, %v462_v4  ;;  %v464_v7 = vld [vmem:[%s2475_s3 + $0x10] sm:$0xff]  ;;  %v465_v8 = vld [vmem:[%s2475_s3 + $0x18] sm:$0xff]  ;;  %v466_v10 = vld [vmem:[%s2475_s3 + $0x20] sm:$0xff]  ;;  %v1974_v62 = vmov 683565275   ;;  %s1242_s30 = sshll.u32 %s1980_s29, 4  ;;  %s1243_s30 = int_to_ptr.vmem [resolvable:$true] %s1242_s30 }
  0xaa   :  { %1381 = vmatprep.subr.msk.mxu1 %vm177_vm0, %v470_v3  ;;  %v1547_v9 = vpack.c.bf16 %v465_v8, %v464_v7  ;;  %v467_v11 = vld [vmem:[%s2475_s3 + $0x28] sm:$0xff]  ;;  %v468_v13 = vld [vmem:[%s2475_s3 + $0x30] sm:$0xff]  ;;  %v469_v14 = vld [vmem:[%s2475_s3 + $0x38] sm:$0xff]  ;;  %v1976_v4 = vmov 2131351028   ;;  %p1934_p3 = scmp.lt.s32.totalorder %s1243_s30, %s1243_s30 }
  0xab   :  { %v1551_v12 = vpack.c.bf16 %v467_v11, %v466_v10  ;;  %v1555_v15 = vpack.c.bf16 %v469_v14, %v468_v13  ;;  %v640_v16 = vld [vmem:[%s2480_s8] sm:$0xff]  ;;  %v641_v17 = vld [vmem:[%s2480_s8 + $0x8] sm:$0xff]  ;;  %v642_v18 = vld [vmem:[%s2480_s8 + $0x10] sm:$0xff]  ;;  %v1978_v8 = vmov 920167782  }
  0xac   :  { %v2224_v19 = vpack.c.bf16 %v641_v17, %v640_v16  ;;  %v643_v20 = vld [vmem:[%s2480_s8 + $0x18] sm:$0xff]  ;;  %v644_v22 = vld [vmem:[%s2480_s8 + $0x20] sm:$0xff]  ;;  %v645_v23 = vld [vmem:[%s2480_s8 + $0x28] sm:$0xff] }
  0xad   :  { %v2229_v21 = vpack.c.bf16 %v643_v20, %v642_v18  ;;  %v2241_v24 = vpack.c.bf16 %v645_v23, %v644_v22  ;;  %v646_v25 = vld [vmem:[%s2480_s8 + $0x30] sm:$0xff]  ;;  %v647_v26 = vld [vmem:[%s2480_s8 + $0x38] sm:$0xff]  ;;  %v648_v28 = vld [vmem:[%s2480_s8 + $0x40] sm:$0xff] }
  0xae   :  { %v160_v1 = vld [vmem:[%s2491_s1] sm:$0xff]  ;;  %v161_v2 = vld [vmem:[%s2491_s1 + $0x8] sm:$0xff]  ;;  %1560 = vmatprep.subr.bf16.mxu0 %v2224_v19  ;;  %v2251_v27 = vpack.c.bf16 %v647_v26, %v646_v25  ;;  %v650_v31 = vld [vmem:[%s2480_s8 + $0x50] sm:$0xff]  ;;  %s1929_s1 = scalar_lea.vmem %s1243_s30, 256 }
  0xaf   :  { %1378 = vmatprep.mubr.msk.f32.mxu1 %vm170_vm1, %v160_v1  ;;  %1562 = vmatpush3.bf16.msra.mxu0 %v2224_v19  ;;  %v649_v29 = vld [vmem:[%s2480_s8 + $0x48] sm:$0xff]  ;;  %v651_v32 = vld [vmem:[%s2480_s8 + $0x58] sm:$0xff]  ;;  %v652_v34 = vld [vmem:[%s2480_s8 + $0x60] sm:$0xff]  ;;  %p1930_p2 = scmp.ne.s32.totalorder %s1243_s30, %s1929_s1  ;;  %p1935_p4 = scmp.lt.s32.totalorder %s1929_s1, %s1929_s1 }
  0xb0   :  { %1379 = vmatmul.mubr.msk.f32.vlgmr.msra.gmra.mrb[0].mxu1 %vm170_vm1, %v161_v2  ;;  %1564 = vmatprep.subr.bf16.mxu0 %v2229_v21  ;;  %v2261_v30 = vpack.c.bf16 %v649_v29, %v648_v28  ;;  %v2271_v33 = vpack.c.bf16 %v651_v32, %v650_v31  ;;  %v653_v35 = vld [vmem:[%s2480_s8 + $0x68] sm:$0xff]  ;;  %v1258_v37 = vld [vmem:[%s2474_s2] ss:$0 sm:$0xff] }
  0xb1   :  { %1383 = vmatprep.mubr.msk.f32.mxu1 %vm170_vm1, %v160_v1  ;;  %1382 = vmatpush3.msk.msra.mxu1 %vm177_vm0, %v470_v3  ;;  %v2281_v36 = vpack.c.bf16 %v653_v35, %v652_v34  ;;  %p1936_p5 = por %p1935_p4, %p1934_p3 }
  0xb2   :  { %1544 = vmatprep.subr.bf16.mxu1 %v1543_v6 }
  0xb3   :  { %1566 = vmatpush3.bf16.msra.mxu0 %v2229_v21  ;;  %p1937_p6 = pnand %p1936_p5, %p1930_p2 }
  0xb4   :  { %1384 = vmatmul.mubr.msk.f32.vlgmr.msra.gmra.mrb[2].mxu1 %vm170_vm1, %v161_v2  ;;  %1568 = vmatprep.subr.bf16.mxu0 %v2241_v24  ;;  %v1975_v2 = vmov 2475754826  }
  0xb5   :  { %1546 = vmatpush3.bf16.msra.mxu1 %v1543_v6  ;;  %v1977_v6 = vmov 2102212464  }
  0xb6   :  { %1548 = vmatprep.subr.bf16.mxu1 %v1547_v9 }
  0xb7   :  { %1570 = vmatpush3.bf16.msra.mxu0 %v2241_v24 }
  0xb8   :  { %1572 = vmatprep.subr.bf16.mxu0 %v2251_v27 }
  0xb9   :  { %1550 = vmatpush3.bf16.msra.mxu1 %v1547_v9 }
  0xba   :  { %1552 = vmatprep.subr.bf16.mxu1 %v1551_v12 }
  0xbb   :  { %1574 = vmatpush3.bf16.msra.mxu0 %v2251_v27 }
  0xbc   :  { %1576 = vmatprep.subr.bf16.mxu0 %v2261_v30 }
  0xbd   :  { %1554 = vmatpush3.bf16.msra.mxu1 %v1551_v12 }
  0xbe   :  { %1556 = vmatprep.subr.bf16.mxu1 %v1555_v15 }
  0xbf   :  { %1578 = vmatpush3.bf16.msra.mxu0 %v2261_v30 }
  0xc0   :  { %1580 = vmatprep.subr.bf16.mxu0 %v2271_v33 }
  0xc1   :  { %1558 = vmatpush3.bf16.msra.mxu1 %v1555_v15  ;;  %v1979_v15 = vmov 1326507024  }
  0xc2   :  { %1592 = vmatprep.subr.bf16.mxu1 %v2224_v19 }
  0xc3   :  { %1582 = vmatpush3.bf16.msra.mxu0 %v2271_v33 }
  0xc4   :  { %1584 = vmatprep.subr.bf16.mxu0 %v2281_v36 }
  0xc7   :  { %1586 = vmatpush3.bf16.msra.mxu0 %v2281_v36 }
 0x183   :  { %v1380_v38 = vpop.f32.mrb[0].mxu1 }
 0x184   :  { %v2289_v39 = vadd.f32 %v1380_v38, %v1258_v37  ;;  %v247_v40 = vpop.f32.mrb[1].mxu1 }
 0x185   :  { %v2291_v41 = vadd.f32 %v1258_v37, %v247_v40 }
 0x186   :  { %v359_v42 = vand.u32 2147483647, %v2289_v39  ;;  %v362_v43 = vand.u32 2139095040, %v2289_v39  ;;  %vm361_vm0 = vcmp.lt.s32.totalorder %v2289_v39, 0 }
 0x187   :  { %v259_v44 = vand.u32 2139095040, %v2291_v41  ;;  %v256_v47 = vand.u32 2147483647, %v2291_v41 }
 0x188   :  { %v363_v45 = vshrl.u32 %v362_v43, 23  ;;  %v366_v46 = vand.u32 8388607, %v359_v42  ;;  %vm2344_vm1 = vcmp.le.f32.partialorder %v359_v42, 0.7853982 }
 0x189   :  { %v260_v48 = vshrl.u32 %v259_v44, 23  ;;  %v2301_v53 = vand.u32 8388607, %v256_v47 }
 0x18a   :  { %v1266_v49 = vadd.s32 4294967169, %v363_v45  ;;  %v367_v52 = vor.u32 8388608, %v366_v46 }
 0x18b   :  { %v1262_v50 = vadd.s32 4294967169, %v260_v48  ;;  %v264_v60 = vor.u32 8388608, %v2301_v53 }
 0x18c   :  { %v369_v51 = vadd.s32 1, %v1266_v49  ;;  %v2303_v59 = vshll.u32 %v367_v52, 8 }
 0x18d   :  { %v266_v54 = vadd.s32 1, %v1262_v50 }
 0x18e   :  { %vm370_vm2 = vcmp.gt.s32.totalorder %v369_v51, 0 }
 0x18f   :  { %v371_v55 = vsel %vm370_vm2, %v369_v51, 0  ;;  %vm267_vm3 = vcmp.gt.s32.totalorder %v266_v54, 0  ;;  %vm258_vm2 = vcmp.lt.s32.totalorder %v2291_v41, 0 }
 0x190   :  { %v372_v56 = vshrl.u32 %v371_v55, 5  ;;  %v373_v57 = vand.u32 31, %v371_v55  ;;  %v268_v58 = vsel %vm267_vm3, %v266_v54, 0  ;;  %vm2356_vm3 = vcmp.le.f32.partialorder %v256_v47, 0.7853982 }
 0x191   :  { %v2306_v0 = vshrl.u32 %v268_v58, 5  ;;  %v270_v1 = vand.u32 31, %v268_v58 }
 0x192   :  { %v374_v61 = vsub.s32 32, %v373_v57  ;;  %v376_v63 = vshll.u32 %v1974_v62, %v373_v57  ;;  %v379_v3 = vshll.u32 %v1975_v2, %v373_v57  ;;  %v382_v5 = vshll.u32 %v1976_v4, %v373_v57 }
 0x193   :  { %v385_v7 = vshll.u32 %v1977_v6, %v373_v57  ;;  %v388_v9 = vshll.u32 %v1978_v8, %v373_v57  ;;  %vm391_vm4 = vcmp.lt.s32.totalorder %v372_v56, 1  ;;  %vm392_vm5 = vcmp.lt.s32.totalorder %v372_v56, 2 }
 0x194   :  { %v377_v10 = vshrl.u32 %v1975_v2, %v374_v61  ;;  %v380_v11 = vshrl.u32 %v1976_v4, %v374_v61  ;;  %v383_v12 = vshrl.u32 %v1977_v6, %v374_v61  ;;  %v375_v13 = vshrl.u32 %v1974_v62, %v374_v61 }
 0x195   :  { %v386_v14 = vshrl.u32 %v1978_v8, %v374_v61  ;;  %v389_v16 = vshrl.u32 %v1979_v15, %v374_v61  ;;  %v271_v22 = vsub.s32 32, %v270_v1  ;;  %vm393_vm6 = vcmp.lt.s32.totalorder %v372_v56, 3 }
 0x196   :  { %v378_v17 = vor.u32 %v377_v10, %v376_v63  ;;  %v381_v18 = vor.u32 %v380_v11, %v379_v3  ;;  %v384_v20 = vor.u32 %v383_v12, %v382_v5  ;;  %vm394_vm7 = vcmp.lt.s32.totalorder %v372_v56, 4 }
 0x197   :  { %v387_v23 = vor.u32 %v386_v14, %v385_v7  ;;  %v390_v25 = vor.u32 %v389_v16, %v388_v9  ;;  %v273_v37 = vshll.u32 %v1974_v62, %v270_v1  ;;  %v274_v43 = vshrl.u32 %v1975_v2, %v271_v22 }
 0x198   :  { %v395_v26 = vsel %vm391_vm4, %v375_v13, %v378_v17  ;;  %v396_v28 = vsel %vm394_vm7, %v384_v20, 2102212464  ;;  %v399_v29 = vsel %vm391_vm4, %v378_v17, %v381_v18  ;;  %v403_v31 = vsel %vm391_vm4, %v381_v18, %v384_v20 }
 0x199   :  { %v397_v32 = vsel %vm393_vm6, %v381_v18, %v396_v28  ;;  %v400_v34 = vsel %vm394_vm7, %v387_v23, 920167782  ;;  %v404_v35 = vsel %vm394_vm7, %v390_v25, 1326507024  ;;  %v276_v44 = vshll.u32 %v1975_v2, %v270_v1 }
 0x19a   :  { %v401_v38 = vsel %vm393_vm6, %v384_v20, %v400_v34  ;;  %v405_v40 = vsel %vm393_vm6, %v387_v23, %v404_v35  ;;  %v398_v45 = vsel %vm392_vm5, %v395_v26, %v397_v32  ;;  %v277_v49 = vshrl.u32 %v1976_v4, %v271_v22 }
 0x19b   :  { %v402_v46 = vsel %vm392_vm5, %v399_v29, %v401_v38  ;;  %v406_v48 = vsel %vm392_vm5, %v403_v31, %v405_v40  ;;  %v275_v54 = vor.u32 %v274_v43, %v273_v37  ;;  %v279_v57 = vshll.u32 %v1976_v4, %v270_v1 }
 0x19c   :  { %v2315_v50 = vmul.u32.u64.low %v2303_v59, %v406_v48  ;;  %v2316_v51 = vmul.u32.u64.high %v2303_v59, %v406_v48, %v2315_v50  ;;  %v2319_v52 = vmul.u32.u64.low %v2303_v59, %v402_v46  ;;  %v2320_v53 = vmul.u32.u64.high %v2303_v59, %v402_v46, %v2319_v52 }
 0x19d   :  { %v278_v55 = vor.u32 %v277_v49, %v276_v44  ;;  %v280_v58 = vshrl.u32 %v1977_v6, %v271_v22  ;;  %v282_v61 = vshll.u32 %v1977_v6, %v270_v1  ;;  %v283_v63 = vshrl.u32 %v1978_v8, %v271_v22 }
 0x19e   :  { %v286_v2 = vshrl.u32 %v1979_v15, %v271_v22  ;;  %v304_v3 = vshll.u32 %v264_v60, 8  ;;  %v414_v56 = vmul.u32 %v2303_v59, %v398_v45  ;;  %v272_v5 = vshrl.u32 %v1974_v62, %v271_v22 }
 0x19f   :  { %v281_v7 = vor.u32 %v280_v58, %v279_v57  ;;  %v285_v9 = vshll.u32 %v1978_v8, %v270_v1  ;;  %vm416_vm8 = vc.u32 %v2316_v51, %v2319_v52  ;;  %v417_v10 = vadd.s32 1, %v2320_v53 }
 0x1a0   :  { %v284_v11 = vor.u32 %v283_v63, %v282_v61  ;;  %vm288_vm9 = vcmp.lt.s32.totalorder %v2306_v0, 1  ;;  %vm290_vm10 = vcmp.lt.s32.totalorder %v2306_v0, 3  ;;  %vm291_vm11 = vcmp.lt.s32.totalorder %v2306_v0, 4 }
 0x1a1   :  { %v287_v12 = vor.u32 %v286_v2, %v285_v9  ;;  %v296_v4 = vsel %vm288_vm9, %v275_v54, %v278_v55  ;;  %v418_v60 = vsel %vm416_vm8, %v417_v10, %v2320_v53  ;;  %v293_v6 = vsel %vm291_vm11, %v281_v7, 2102212464 }
 0x1a2   :  { %v297_v59 = vsel %vm291_vm11, %v284_v11, 920167782  ;;  %v300_v62 = vsel %vm288_vm9, %v278_v55, %v281_v7  ;;  %v419_v13 = vadd.s32 %v418_v60, %v414_v56  ;;  %vm289_vm12 = vcmp.lt.s32.totalorder %v2306_v0, 2 }
 0x1a3   :  { %v298_v1 = vsel %vm290_vm10, %v281_v7, %v297_v59  ;;  %v301_v8 = vsel %vm291_vm11, %v287_v12, 1326507024  ;;  %v292_v14 = vsel %vm288_vm9, %v272_v5, %v275_v54  ;;  %v294_v15 = vsel %vm290_vm10, %v278_v55, %v293_v6 }
 0x1a4   :  { %v299_v16 = vsel %vm289_vm12, %v296_v4, %v298_v1  ;;  %v302_v17 = vsel %vm290_vm10, %v284_v11, %v301_v8  ;;  %v420_v18 = vadd.s32 536870912, %v419_v13  ;;  %v295_v29 = vsel %vm289_vm12, %v292_v14, %v294_v15  ;;  %v852_v14 = vld [vmem:[%s2481_s9 + $0x50] sm:$0xff] }
 0x1a5   :  { %v303_v20 = vsel %vm289_vm12, %v300_v62, %v302_v17  ;;  %v2330_v22 = vmul.u32.u64.low %v304_v3, %v299_v16  ;;  %v2331_v23 = vmul.u32.u64.high %v304_v3, %v299_v16, %v2330_v22  ;;  %v311_v0 = vmul.u32 %v304_v3, %v295_v29 }
 0x1a6   :  { %v2333_v25 = vmul.u32.u64.low %v304_v3, %v303_v20  ;;  %v2334_v26 = vmul.u32.u64.high %v304_v3, %v303_v20, %v2333_v25  ;;  %v421_v28 = vshrl.u32 %v420_v18, 30  ;;  %v415_v54 = vadd.s32 %v2319_v52, %v2316_v51 }
 0x1a7   :  { %v314_v32 = vadd.s32 1, %v2331_v23  ;;  %vm451_vm7 = vweird.f32 %v2289_v39  ;;  %vm549_vm11 = vcmask 523264   ;;  %vm348_vm12 = vweird.f32 %v2291_v41 }
 0x1a8   :  { %v422_v31 = vshll.u32 %v421_v28, 30  ;;  %vm313_vm13 = vc.u32 %v2334_v26, %v2330_v22  ;;  %v312_v4 = vadd.s32 %v2330_v22, %v2334_v26  ;;  %v445_v16 = vsub.s32 4, %v421_v28 }
 0x1a9   :  { %v315_v35 = vsel %vm313_vm13, %v314_v32, %v2331_v23  ;;  %vm944_vm13 = vcmask 261120  }
 0x1aa   :  { %v423_v34 = vsub.s32 %v419_v13, %v422_v31  ;;  %v316_v37 = vadd.s32 %v315_v35, %v311_v0  ;;  %v446_v23 = vsel %vm361_vm0, %v445_v16, %v421_v28 }
 0x1ab   :  { %v448_v42 = vsel %vm2344_vm1, 0, %v446_v23  ;;  %v857_v23 = vld [vmem:[%s2481_s9 + $0x78] sm:$0xff] }
 0x1ac   :  { %v425_v38 = vsub.s32 0, %v423_v34  ;;  %v317_v40 = vadd.s32 536870912, %v316_v37  ;;  %v452_v28 = vand.u32 3, %v448_v42  ;;  %v941_v42 = vld [vmem:[%s2485_s13 + $0x8] sm:$0xff] }
 0x1ae   :  { %v1267_v43 = vmin.u32 %v425_v38, %v423_v34  ;;  %v318_v44 = vshrl.u32 %v317_v40, 30  ;;  %vm457_vm4 = vcmp.eq.s32.totalorder %v452_v28, 2  ;;  %vm454_vm5 = vcmp.eq.s32.totalorder %v452_v28, 0 }
 0x1af   :  { %vm453_vm6 = vcmp.lt.s32.totalorder %v452_v28, 2 }
 0x1b0   :  { %v427_v45 = vclz %v1267_v43  ;;  %v319_v46 = vshll.u32 %v318_v44, 30  ;;  %v342_v32 = vsub.s32 4, %v318_v44 }
 0x1b2   :  { %v1268_v48 = vadd.s32 4294967294, %v427_v45  ;;  %v320_v49 = vsub.s32 %v316_v37, %v319_v46  ;;  %v343_v37 = vsel %vm258_vm2, %v342_v32, %v318_v44 }
 0x1b3   :  { %v345_v47 = vsel %vm2356_vm3, 0, %v343_v37 }
 0x1b4   :  { %vm1269_vm14 = vcmp.lt.s32.totalorder %v1268_v48, 0  ;;  %v322_v53 = vsub.s32 0, %v320_v49 }
 0x1b5   :  { %v430_v50 = vsel %vm1269_vm14, 0, %v1268_v48 }
 0x1b6   :  { %v431_v55 = vsub.s32 32, %v430_v50  ;;  %v435_v57 = vsub.s32 4294967266, %v430_v50  ;;  %v1263_v58 = vmin.u32 %v322_v53, %v320_v49  ;;  %v432_v61 = vshll.u32 %v423_v34, %v430_v50 }
 0x1b8   :  { %v433_v63 = vshrl.u32 %v415_v54, %v431_v55  ;;  %v436_v2 = vadd.s32 127, %v435_v57  ;;  %v324_v3 = vclz %v1263_v58 }
 0x1ba   :  { %v434_v56 = vor.u32 %v433_v63, %v432_v61  ;;  %v437_v5 = vshll.u32 %v436_v2, 23  ;;  %v1264_v7 = vadd.s32 4294967294, %v324_v3 }
 0x1bc   :  { %v438_v9 = vor.u32 4788187, %v437_v5  ;;  %vm1265_vm15 = vcmp.lt.s32.totalorder %v1264_v7, 0  ;;  %v441_v11 = vcvt.s32.f32 %v434_v56 }
 0x1bd   :  { %v327_v12 = vsel %vm1265_vm15, 0, %v1264_v7  ;;  %v842_v7 = vld [vmem:[%s2481_s9] sm:$0xff] }
 0x1be   :  { %v439_v10 = vand.u32 2147483647, %v438_v9  ;;  %v328_v60 = vsub.s32 32, %v327_v12  ;;  %v332_v6 = vsub.s32 4294967266, %v327_v12  ;;  %v329_v52 = vshll.u32 %v320_v49, %v327_v12  ;;  %v843_v9 = vld [vmem:[%s2481_s9 + $0x8] sm:$0xff]  ;;  %v845_v12 = vld [vmem:[%s2481_s9 + $0x18] sm:$0xff] }
 0x1bf   :  { %v349_v49 = vand.u32 3, %v345_v47 }
 0x1c0   :  { %v442_v51 = vmul.f32 %v441_v11, %v439_v10  ;;  %v330_v59 = vshrl.u32 %v312_v4, %v328_v60  ;;  %v333_v62 = vadd.s32 127, %v332_v6  ;;  %v1623_v10 = vpack.c.bf16 %v843_v9, %v842_v7  ;;  %v844_v11 = vld [vmem:[%s2481_s9 + $0x10] sm:$0xff]  ;;  %v846_v60 = vld [vmem:[%s2481_s9 + $0x20] sm:$0xff]  ;;  %v847_v6 = vld [vmem:[%s2481_s9 + $0x28] sm:$0xff] }
 0x1c1   :  { %vm354_vm8 = vcmp.eq.s32.totalorder %v349_v49, 2  ;;  %vm351_vm9 = vcmp.eq.s32.totalorder %v349_v49, 0  ;;  %vm350_vm10 = vcmp.lt.s32.totalorder %v349_v49, 2  ;;  %v1627_v4 = vpack.c.bf16 %v845_v12, %v844_v11  ;;  %v1143_v9 = vld [vmem:[#allocation16] sm:$0xff]  ;;  %v1145_v11 = vld [vmem:[#allocation16 + $0x10] sm:$0xff] }
 0x1c2   :  { %v443_v13 = vxor.u32 2147483648, %v442_v51  ;;  %v331_v1 = vor.u32 %v330_v59, %v329_v52  ;;  %v334_v8 = vshll.u32 %v333_v62, 23  ;;  %v1631_v52 = vpack.c.bf16 %v847_v6, %v846_v60  ;;  %v849_v59 = vld [vmem:[%s2481_s9 + $0x38] sm:$0xff] }
 0x1c4   :  { %v444_v15 = vsel %vm361_vm0, %v443_v13, %v442_v51  ;;  %v335_v18 = vor.u32 4788187, %v334_v8  ;;  %v338_v22 = vcvt.s32.f32 %v331_v1  ;;  %v848_v51 = vld [vmem:[%s2481_s9 + $0x30] sm:$0xff]  ;;  %v850_v13 = vld [vmem:[%s2481_s9 + $0x40] sm:$0xff]  ;;  %v851_v1 = vld [vmem:[%s2481_s9 + $0x48] sm:$0xff] }
 0x1c5   :  { %v447_v17 = vsel %vm2344_vm1, %v2289_v39, %v444_v15  ;;  %v1635_v62 = vpack.c.bf16 %v849_v59, %v848_v51  ;;  %v1639_v8 = vpack.c.bf16 %v851_v1, %v850_v13  ;;  %v853_v15 = vld [vmem:[%s2481_s9 + $0x58] sm:$0xff]  ;;  %v1283_v13 = vld [vmem:[#allocation13] ss:$0 sm:$0xff] }
 0x1c6   :  { %1707 = vcosq.f32 %v447_v17  ;;  %v336_v20 = vand.u32 2147483647, %v335_v18  ;;  %v1643_v16 = vpack.c.bf16 %v853_v15, %v852_v14  ;;  %v855_v18 = vld [vmem:[%s2481_s9 + $0x68] sm:$0xff]  ;;  %v1284_v15 = vld [vmem:[#allocation14] ss:$0 sm:$0xff] }
 0x1c7   :  { %1709 = vsinq.f32 %v447_v17  ;;  %v854_v17 = vld [vmem:[%s2481_s9 + $0x60] sm:$0xff] }
 0x1c8   :  { %v339_v25 = vmul.f32 %v338_v22, %v336_v20  ;;  %v1647_v20 = vpack.c.bf16 %v855_v18, %v854_v17  ;;  %v856_v22 = vld [vmem:[%s2481_s9 + $0x70] sm:$0xff] }
 0x1ca   :  { %v340_v26 = vxor.u32 2147483648, %v339_v25 }
 0x1cc   :  { %v341_v29 = vsel %vm258_vm2, %v340_v26, %v339_v25  ;;  %v1651_v25 = vpack.c.bf16 %v857_v23, %v856_v22  ;;  %v940_v26 = vld [vmem:[%s2485_s13] sm:$0xff] }
 0x1cd   :  { %v344_v0 = vsel %vm2356_vm3, %v2291_v41, %v341_v29  ;;  %v1655_v29 = vpack.c.bf16 %v941_v42, %v940_v26 }
 0x1ce   :  { %1711 = vcosq.f32 %v344_v0 }
 0x1cf   :  { %1713 = vsinq.f32 %v344_v0 }
 0x1d0   :  { %v1708_v34 = vpop.eup %1707 }
 0x1d1   :  { %v1710_v35 = vpop.eup %1709  ;;  %v458_v38 = vxor.u32 2147483648, %v1708_v34 }
 0x1d2   :  { %v455_v40 = vxor.u32 2147483648, %v1710_v35 }
 0x1d3   :  { %v459_v43 = vsel %vm457_vm4, %v458_v38, %v1710_v35  ;;  %v1276_v35 = vld [vmem:[#allocation8] ss:$0 sm:$0xff] }
 0x1d4   :  { %v456_v45 = vsel %vm454_vm5, %v1708_v34, %v455_v40 }
 0x1d5   :  { %v460_v46 = vsel %vm453_vm6, %v456_v45, %v459_v43  ;;  %v1277_v43 = vld [vmem:[#allocation10] ss:$0 sm:$0xff] }
 0x1d6   :  { %v461_v48 = vsel %vm451_vm7, nan, %v460_v46 }
 0x1d8   :  { %v1712_v50 = vpop.eup %1711 }
 0x1d9   :  { %v1714_v53 = vpop.eup %1713  ;;  %v355_v54 = vxor.u32 2147483648, %v1712_v50 }
 0x1da   :  { %v352_v55 = vxor.u32 2147483648, %v1714_v53 }
 0x1db   :  { %v356_v44 = vsel %vm354_vm8, %v355_v54, %v1714_v53 }
 0x1dc   :  { %v353_v57 = vsel %vm351_vm9, %v1712_v50, %v352_v55 }
 0x1dd   :  { %v357_v58 = vsel %vm350_vm10, %v353_v57, %v356_v44 }
 0x1de   :  { %v358_v61 = vsel %vm348_vm12, nan, %v357_v58 }
 0x1df   :  { %1402 = vmatprep.mubr.msk.f32.mxu1 %vm549_vm11, %v358_v61 }
 0x1e0   :  { %1403 = vmatmul.mubr.msk.f32.vlgmr.msra.gmra.mrb[2].mxu1 %vm549_vm11, %v461_v48 }
 0x1e1   :  { %1594 = vmatpush3.bf16.msra.mxu1 %v2224_v19  ;;  %v654_v19 = vld [vmem:[%s2480_s8 + $0x70] sm:$0xff] }
 0x1e2   :  { %1596 = vmatprep.subr.bf16.mxu1 %v2229_v21 }
 0x1e5   :  { %1598 = vmatpush3.bf16.msra.mxu1 %v2229_v21  ;;  %v655_v21 = vld [vmem:[%s2480_s8 + $0x78] sm:$0xff] }
 0x1e6   :  { %1600 = vmatprep.subr.bf16.mxu1 %v2241_v24 }
 0x1e9   :  { %1602 = vmatpush3.bf16.msra.mxu1 %v2241_v24  ;;  %v1587_v24 = vpack.c.bf16 %v655_v21, %v654_v19  ;;  %v942_v21 = vld [vmem:[%s2485_s13 + $0x10] sm:$0xff] }
 0x1ea   :  { %1604 = vmatprep.subr.bf16.mxu1 %v2251_v27 }
 0x1eb   :  { %1588 = vmatprep.subr.bf16.mxu0 %v1587_v24 }
 0x1ec   :  { %1590 = vmatpush3.bf16.msra.mxu0 %v1587_v24 }
 0x1ed   :  { %1606 = vmatpush3.bf16.msra.mxu1 %v2251_v27  ;;  %v1275_v27 = vld [vmem:[#allocation7] ss:$0 sm:$0xff]  ;;  %1624 = vmatprep.subr.bf16.mxu0 %v1623_v10 }
 0x1ee   :  { %1608 = vmatprep.subr.bf16.mxu1 %v2261_v30 }
 0x1f1   :  { %1610 = vmatpush3.bf16.msra.mxu1 %v2261_v30 }
 0x1f2   :  { %1612 = vmatprep.subr.bf16.mxu1 %v2271_v33 }
 0x1f5   :  { %1614 = vmatpush3.bf16.msra.mxu1 %v2271_v33 }
 0x1f6   :  { %1616 = vmatprep.subr.bf16.mxu1 %v2281_v36 }
 0x1f9   :  { %1618 = vmatpush3.bf16.msra.mxu1 %v2281_v36 }
 0x1fa   :  { %1620 = vmatprep.subr.bf16.mxu1 %v1587_v24 }
 0x1fd   :  { %1622 = vmatpush3.bf16.msra.mxu1 %v1587_v24  ;;  %v943_v24 = vld [vmem:[%s2485_s13 + $0x18] sm:$0xff] }
 0x1fe   :  { %1656 = vmatprep.subr.bf16.mxu1 %v1655_v29 }
 0x2b3   :  { %v1404_v30 = vpop.f32.mrb[2].mxu1 }
 0x2b4   :  { %v622_v33 = vpop.f32.mrb[3].mxu1  ;;  %v639_v41 = vadd.f32 %v1404_v30, %v1275_v27  ;;  %v1278_v30 = vld [vmem:[#allocation11] ss:$0 sm:$0xff] }
 0x2b5   :  { %v638_v39 = vadd.f32 %v1275_v27, %v622_v33  ;;  %v1659_v27 = vpack.c.bf16 %v943_v24, %v942_v21 }
 0x2b7   :  { %1437 = vmatprep.mubr.f32.mxu0 %v638_v39 }
 0x2b8   :  { %1438 = vmatmul.mubr.f32.vlgmr.msra.gmra.mrb[0].mxu0 %v639_v41 }
 0x2b9   :  { %1626 = vmatpush3.bf16.msra.mxu0 %v1623_v10  ;;  %v1144_v10 = vld [vmem:[#allocation16 + $0x8] sm:$0xff] }
 0x2ba   :  { %1628 = vmatprep.subr.bf16.mxu0 %v1627_v4  ;;  %v1671_v12 = vpack.c.bf16 %v1144_v10, %v1143_v9 }
 0x2bd   :  { %1630 = vmatpush3.bf16.msra.mxu0 %v1627_v4  ;;  %v1146_v4 = vld [vmem:[#allocation16 + $0x18] sm:$0xff] }
 0x2be   :  { %1632 = vmatprep.subr.bf16.mxu0 %v1631_v52  ;;  %v1675_v60 = vpack.c.bf16 %v1146_v4, %v1145_v11 }
 0x2c1   :  { %1634 = vmatpush3.bf16.msra.mxu0 %v1631_v52 }
 0x2c2   :  { %1636 = vmatprep.subr.bf16.mxu0 %v1635_v62 }
 0x2c5   :  { %1638 = vmatpush3.bf16.msra.mxu0 %v1635_v62 }
 0x2c6   :  { %1640 = vmatprep.subr.bf16.mxu0 %v1639_v8 }
 0x2c9   :  { %1642 = vmatpush3.bf16.msra.mxu0 %v1639_v8 }
 0x2ca   :  { %1644 = vmatprep.subr.bf16.mxu0 %v1643_v16 }
 0x2cd   :  { %1646 = vmatpush3.bf16.msra.mxu0 %v1643_v16 }
 0x2ce   :  { %1648 = vmatprep.subr.bf16.mxu0 %v1647_v20 }
 0x2d1   :  { %1650 = vmatpush3.bf16.msra.mxu0 %v1647_v20 }
 0x2d2   :  { %1652 = vmatprep.subr.bf16.mxu0 %v1651_v25 }
 0x2d5   :  { %1654 = vmatpush3.bf16.msra.mxu0 %v1651_v25 }
 0x2d6   :  { %1672 = vmatprep.subr.bf16.mxu0 %v1671_v12 }
 0x38b   :  { %v1439_v36 = vpop.f32.mrb[0].mxu0 }
 0x38c   :  { %v732_v63 = vsub.f32 %v639_v41, %v1439_v36  ;;  %v722_v2 = vpop.f32.mrb[1].mxu0 }
 0x38d   :  { %v731_v3 = vsub.f32 %v638_v39, %v722_v2 }
 0x38e   :  { %v734_v5 = vmul.f32 %v732_v63, %v732_v63 }
 0x38f   :  { %v733_v56 = vmul.f32 %v731_v3, %v731_v3 }
 0x391   :  { %1472 = vmatprep.mubr.f32.mxu1 %v733_v56 }
 0x392   :  { %1473 = vmatmul.mubr.f32.vlgmr.msra.gmra.mrb[4].mxu1 %v734_v5 }
 0x393   :  { %1658 = vmatpush3.bf16.msra.mxu1 %v1655_v29 }
 0x394   :  { %1660 = vmatprep.subr.bf16.mxu1 %v1659_v27 }
 0x397   :  { %1662 = vmatpush3.bf16.msra.mxu1 %v1659_v27 }
 0x398   :  { %1664 = vmatprep.subr.bf16.mxu1 %v1655_v29 }
 0x465   :  { %v1474_v31 = vpop.f32.mrb[4].mxu1 }
 0x466   :  { %v807_v32 = vadd.f32 1e-05, %v1474_v31  ;;  %v801_v0 = vpop.f32.mrb[5].mxu1 }
 0x467   :  { %v802_v28 = vadd.f32 1e-05, %v801_v0 }
 0x468   :  { %1715 = vrsqrt.f32 %v807_v32 }
 0x469   :  { %1717 = vrsqrt.f32 %v802_v28 }
 0x472   :  { %v1716_v34 = vpop.eup %1715 }
 0x473   :  { %v1718_v37 = vpop.eup %1717  ;;  %v813_v38 = vmul.f32 %v1716_v34, %v732_v63  ;;  %v1285_v34 = vld [vmem:[%s2487_s15] ss:$0 sm:$0xff] }
 0x474   :  { %v812_v40 = vmul.f32 %v1718_v37, %v731_v3 }
 0x475   :  { %v822_v47 = vmul.f32 %v1276_v35, %v813_v38 }
 0x476   :  { %v821_v45 = vmul.f32 %v1276_v35, %v812_v40 }
 0x477   :  { %v831_v46 = vadd.f32 %v1277_v43, %v822_v47 }
 0x478   :  { %v830_v48 = vadd.f32 %v1277_v43, %v821_v45 }
 0x479   :  { %v835_v49 = vmul.f32 0.70710677, %v831_v46  ;;  %v833_v58 = vmul.f32 0.5, %v831_v46 }
 0x47a   :  { %v834_v50 = vmul.f32 0.70710677, %v830_v48  ;;  %v832_v44 = vmul.f32 0.5, %v830_v48 }
 0x47b   :  { %1719 = verf.f32 %v835_v49 }
 0x47c   :  { %1721 = verf.f32 %v834_v50 }
 0x485   :  { %v1720_v53 = vpop.eup %1719 }
 0x486   :  { %v1722_v54 = vpop.eup %1721  ;;  %v839_v55 = vadd.f32 1.0, %v1720_v53 }
 0x487   :  { %v838_v57 = vadd.f32 1.0, %v1722_v54 }
 0x488   :  { %v841_v19 = vmul.f32 %v839_v55, %v833_v58 }
 0x489   :  { %v840_v61 = vmul.f32 %v838_v57, %v832_v44 }
 0x48b   :  { %1507 = vmatprep.mubr.f32.mxu0 %v840_v61 }
 0x48c   :  { %1508 = vmatmul.mubr.f32.vlgmr.msra.gmra.mrb[2].mxu0 %v841_v19 }
 0x48d   :  { %1674 = vmatpush3.bf16.msra.mxu0 %v1671_v12 }
 0x48e   :  { %1676 = vmatprep.subr.bf16.mxu0 %v1675_v60 }
 0x491   :  { %1678 = vmatpush3.bf16.msra.mxu0 %v1675_v60 }
 0x55f   :  { %v1509_v33 = vpop.f32.mrb[2].mxu0 }
 0x560   :  { %v931_v39 = vpop.f32.mrb[3].mxu0  ;;  %v937_v36 = vadd.f32 %v1509_v33, %v1278_v30 }
 0x561   :  { %v932_v41 = vadd.f32 %v1278_v30, %v931_v39 }
 0x563   :  { %1518 = vmatprep.mubr.msk.f32.mxu1 %vm944_vm13, %v932_v41 }
 0x564   :  { %1519 = vmatmul.mubr.msk.f32.vlgmr.msra.gmra.mrb[6].mxu1 %vm944_vm13, %v937_v36 }
 0x565   :  { %1666 = vmatpush3.bf16.msra.mxu1 %v1655_v29 }
 0x566   :  { %1668 = vmatprep.subr.bf16.mxu1 %v1659_v27 }
 0x569   :  { %1670 = vmatpush3.bf16.msra.mxu1 %v1659_v27 }
 0x637   :  { %v1520_v63 = vpop.f32.mrb[6].mxu1 }
 0x638   :  { %v1027_v2 = vsub.f32 %v937_v36, %v1520_v63  ;;  %v1017_v3 = vpop.f32.mrb[7].mxu1 }
 0x639   :  { %v1026_v56 = vsub.f32 %v932_v41, %v1017_v3 }
 0x63a   :  { %v1029_v7 = vmul.f32 %v1027_v2, %v1027_v2 }
 0x63b   :  { %v1028_v5 = vmul.f32 %v1026_v56, %v1026_v56 }
 0x63d   :  { %1529 = vmatprep.mubr.msk.f32.mxu1 %vm944_vm13, %v1028_v5 }
 0x63e   :  { %1530 = vmatmul.mubr.msk.f32.vlgmr.msra.gmra.mrb[8].mxu1 %vm944_vm13, %v1029_v7 }
 0x711   :  { %v1531_v6 = vpop.f32.mrb[8].mxu1 }
 0x712   :  { %v1108_v51 = vadd.f32 1e-05, %v1531_v6  ;;  %v1102_v52 = vpop.f32.mrb[9].mxu1 }
 0x713   :  { %v1103_v59 = vadd.f32 1e-05, %v1102_v52 }
 0x714   :  { %1723 = vrsqrt.f32 %v1108_v51 }
 0x715   :  { %1725 = vrsqrt.f32 %v1103_v59 }
 0x71e   :  { %v1724_v62 = vpop.eup %1723 }
 0x71f   :  { %v1726_v1 = vpop.eup %1725  ;;  %v1114_v8 = vmul.f32 %v1724_v62, %v1027_v2 }
 0x720   :  { %v1113_v14 = vmul.f32 %v1726_v1, %v1026_v56 }
 0x721   :  { %v1123_v16 = vmul.f32 %v1283_v13, %v1114_v8 }
 0x722   :  { %v1122_v17 = vmul.f32 %v1283_v13, %v1113_v14 }
 0x723   :  { %v1132_v18 = vadd.f32 %v1284_v15, %v1123_v16 }
 0x724   :  { %v1131_v20 = vadd.f32 %v1284_v15, %v1122_v17 }
 0x725   :  { %v1136_v22 = vmul.f32 0.70710677, %v1132_v18  ;;  %v1134_v32 = vmul.f32 0.5, %v1132_v18 }
 0x726   :  { %v1135_v23 = vmul.f32 0.70710677, %v1131_v20  ;;  %v1133_v29 = vmul.f32 0.5, %v1131_v20 }
 0x727   :  { %1727 = verf.f32 %v1136_v22 }
 0x728   :  { %1729 = verf.f32 %v1135_v23 }
 0x731   :  { %v1728_v25 = vpop.eup %1727 }
 0x732   :  { %v1730_v26 = vpop.eup %1729  ;;  %v1140_v42 = vadd.f32 1.0, %v1728_v25 }
 0x733   :  { %v1139_v31 = vadd.f32 1.0, %v1730_v26 }
 0x734   :  { %v1142_v28 = vmul.f32 %v1140_v42, %v1134_v32 }
 0x735   :  { %v1141_v0 = vmul.f32 %v1139_v31, %v1133_v29 }
 0x737   :  { %1540 = vmatprep.mubr.msk.f32.mxu0 %vm944_vm13, %v1141_v0 }
 0x738   :  { %1541 = vmatmul.mubr.msk.f32.vlgmr.msra.gmra.mrb[4].mxu0 %vm944_vm13, %v1142_v28 }
 0x80b   :  { %v1542_v35 = vpop.f32.mrb[4].mxu0 }
 0x80c   :  { %v1232_v37 = vadd.f32 %v1542_v35, %v1285_v34  ;;  %v1226_v38 = vpop.f32.mrb[5].mxu0 }
 0x80d   :  { %v1227_v40 = vadd.f32 %v1285_v34, %v1226_v38 }
 0x80e   :  { %1236 = vst.msk [vmem:[#allocation17 + $0x8] sm:$0xff] %vm944_vm13, %v1232_v37 }
 0x80f   :  { %1235 = vst.msk [vmem:[#allocation17] sm:$0xff] %vm944_vm13, %v1227_v40 }
 0x810   :  { %1940 = shalt.err (!%p1937_p6)
}
 0x811   :  { %s1941_s4 = scalar_lea.hbm %s2488_s16, 256 }
 0x812   :  { %p1942_p7 = scmp.ne.s32.totalorder %s2488_s16, %s1941_s4  ;;  %p1945_p8 = scmp.lt.u32.totalorder %s1941_s4, %s2488_s16 }
 0x814   :  { %p1947_p9 = pnand %p1945_p8, %p1942_p7 }
 0x816   :  { %1950 = shalt.err (!%p1947_p9)
}
 0x817   :  { %1248 = dma.vmem_to_hbm [thread:$0]  %s1243_s30, 256, %s2488_s16, [#allocation4], %s1972_s11, %s1972_s11, %s1973_s18  }
 0x818   :  { %1961 = dma.done.wait [#allocation4], 256  }
 0x819   :  { %1962 = vsyncadd [#allocation4], 4294967040 }
 0x81a   :  { %1252 = vsyncpa [#allocation3], 1 }
 0x81b   :  { %1253 = vsyncpa [#allocation6], 1 }
 0x81c   :  { %1254 = vsyncpa [#allocation9], 1 }
 0x81d   :  { %1255 = vsyncpa [#allocation12], 1 }
 0x81e   :  { %1256 = vsyncpa [#allocation15], 1 }
 0x81f   :  { %1257 = vsyncpa [#allocation4], 1 }

</bundles_post_ra>
